<compile_context>
chip_gen: v6e
topology: v6e:2x2x1
jax: 0.10.0
libtpu: 0.0.40
codegen_flags: <defaults>
</compile_context>

<pallas_src>
import functools

import jax
import jax.numpy as jnp
from jax import lax
from jax.experimental import pallas as pl
from jax.experimental.pallas import tpu as pltpu

_CHUNK = 256                              # rows per inner slice (32 vregs of (chunk,1) f32)
_VMEM_BLOCK_BUDGET = 20 * 1024 * 1024     # double-buffered input blocks (logits + targets)
_VMEM_LIMIT = 32 * 1024 * 1024            # <= per-TC VMEM on v7x; fine on v5e/v6e


def _focal_loss_kernel(logits_ref, targets_ref, out_ref, acc_ref, *,
                       gamma, n_valid, row_tile, chunk):
    s = pl.program_id(0)                  # parallel (TensorCore) slice
    k = pl.program_id(1)                  # reduction step within the slice
    steps = pl.num_programs(1)

    @pl.when(k == 0)
    def _():
        acc_ref[...] = jnp.zeros_like(acc_ref)

    block_row0 = (s * steps + k) * row_tile
    g = float(gamma)

    def chunk_body(ci):
        if isinstance(ci, int):
            r0 = ci * chunk
        else:
            r0 = pl.multiple_of(ci * chunk, chunk)

        x = logits_ref[pl.ds(r0, chunk), :].astype(jnp.float32)    # (chunk, C)
        t = targets_ref[pl.ds(r0, chunk), :]                       # (chunk, 1) int32

        # Numerically stable softmax pieces over the class (lane) axis.
        m = jnp.max(x, axis=-1, keepdims=True)                     # (chunk, 1)
        e = jnp.exp(x - m)                                         # (chunk, C)
        se = jnp.sum(e, axis=-1, keepdims=True)                    # (chunk, 1)

        # Single one-hot gather of the target logit (select + one lane reduce).
        lane = lax.broadcasted_iota(jnp.int32, x.shape, 1)
        tgt_logit = jnp.sum(jnp.where(lane == t, x, 0.0),
                            axis=-1, keepdims=True)                # (chunk, 1)

        ce = jnp.log(se) + m - tgt_logit                           # per-row CE
        pt = jnp.exp(-ce)                                          # EUP; no 2nd one-hot reduce
        one_minus_pt = jnp.maximum(1.0 - pt, 0.0)                  # guard pt > 1 rounding
        if g == 0.0:
            w = jnp.ones_like(ce)
        elif g == 2.0:
            w = one_minus_pt * one_minus_pt                        # single VPU mul
        elif g == float(int(g)) and g > 0.0:
            w = lax.integer_pow(one_minus_pt, int(g))
        else:
            w = one_minus_pt ** g                                  # general float exponent
        focal = w * ce                                             # alpha & 1/N folded into wrapper

        row0_g = block_row0 + r0

        @pl.when(row0_g + chunk <= n_valid)                        # fast path: all rows valid
        def _():
            acc_ref[...] += focal

        @pl.when(row0_g + chunk > n_valid)                         # ragged tail only
        def _():
            rows = row0_g + lax.broadcasted_iota(jnp.int32, focal.shape, 0)
            acc_ref[...] += jnp.where(rows < n_valid, focal, 0.0)

    num_chunks = row_tile // chunk
    if num_chunks <= 8:
        for ci in range(num_chunks):                               # fully unrolled
            chunk_body(ci)
    else:
        def body(ci, carry):
            chunk_body(ci)
            return carry
        lax.fori_loop(0, num_chunks, body, 0)

    @pl.when(k == steps - 1)
    def _():
        total = jnp.sum(acc_ref[...])                              # one reduce per slice
        out_ref[...] = jnp.full(out_ref.shape, total, dtype=jnp.float32)


def _pick_row_tile(n, c, itemsize):
    """Rows per block: sized by bytes, multiple of the dtype sublane alignment."""
    align = max(8, 8 * (4 // max(int(itemsize), 1)))   # f32: 8, bf16: 16
    n_al = ((n + align - 1) // align) * align
    if n_al <= _CHUNK:
        return max(align, n_al)
    # Per-row VMEM cost (double buffered): logits row = c*itemsize bytes;
    # the (row_tile, 1) int32 targets block inflates to 512 B/row in VMEM
    # after (8,128) tiling (HBM traffic stays 4 B/row).
    per_row = 2 * (c * int(itemsize) + 512)
    rows = max(align, _VMEM_BLOCK_BUDGET // per_row)
    if rows >= _CHUNK:
        rows = (rows // _CHUNK) * _CHUNK
        chunks_needed = -(-n_al // _CHUNK)
        rows = min(rows, chunks_needed * _CHUNK)
    else:
        # TODO(synk): very large class counts need class-dim tiling (two-pass
        # softmax); here we just fall back to a small row tile.
        rows = max(align, (rows // align) * align)
    return rows


def _num_parallel_slices(num_blocks):
    """2 only on parts exposing 2 TensorCores to one Pallas program."""
    if num_blocks < 2 or num_blocks % 2 != 0:
        return 1
    try:
        kind = jax.devices()[0].device_kind.lower()
    except Exception:
        return 1
    if "lite" in kind or "v5e" in kind or "v6e" in kind:
        return 1
    if "v4" in kind or "v5p" in kind or "v7" in kind:
        return 2
    return 1


def focal_loss(logits, targets, *, alpha=0.25, gamma=2.0, row_tile=None,
               num_parallel=None):
    """logits: (N, C) float (f32 or bf16); targets: (N,) int.  Returns scalar f32."""
    n, c = logits.shape
    targets = targets.astype(jnp.int32).reshape(n, 1)

    itemsize = jnp.dtype(logits.dtype).itemsize
    if row_tile is None:
        row_tile = _pick_row_tile(n, c, itemsize)
    align = max(8, 8 * (4 // max(int(itemsize), 1)))
    assert row_tile % align == 0, "row_tile must be sublane-aligned for the dtype"
    if row_tile > _CHUNK:
        assert row_tile % _CHUNK == 0, "row_tile > 256 must be a multiple of 256"
    chunk = min(_CHUNK, row_tile)

    num_blocks = pl.cdiv(n, row_tile)
    num_par = _num_parallel_slices(num_blocks) if num_parallel is None else int(num_parallel)
    num_par = max(1, num_par)
    if num_blocks % num_par != 0:
        num_par = 1
    steps = num_blocks // num_par

    kernel = functools.partial(
        _focal_loss_kernel,
        gamma=float(gamma), n_valid=n, row_tile=row_tile, chunk=chunk,
    )

    partials = pl.pallas_call(
        kernel,
        out_shape=jax.ShapeDtypeStruct((num_par * 8, 128), jnp.float32),
        grid_spec=pltpu.PrefetchScalarGridSpec(
            num_scalar_prefetch=0,
            grid=(num_par, steps),
            in_specs=[
                pl.BlockSpec((row_tile, c), lambda s, k: (s * steps + k, 0)),
                pl.BlockSpec((row_tile, 1), lambda s, k: (s * steps + k, 0)),
            ],
            out_specs=pl.BlockSpec((8, 128), lambda s, k: (s, 0)),
            scratch_shapes=[pltpu.VMEM((chunk, 1), jnp.float32)],
        ),
        compiler_params=pltpu.CompilerParams(
            dimension_semantics=("parallel", "arbitrary"),
            vmem_limit_bytes=_VMEM_LIMIT,
        ),
    )(logits, targets)

    per_slice = partials.reshape(num_par, 8, 128)[:, 0, 0]
    return (jnp.float32(alpha) * jnp.sum(per_slice)) / jnp.float32(n)


def _focal_loss_ref(logits, targets, alpha, gamma):
    logits = logits.astype(jnp.float32)
    lse = jax.scipy.special.logsumexp(logits, axis=-1)
    tgt = jnp.take_along_axis(logits, targets[:, None].astype(jnp.int32), axis=-1)[:, 0]
    ce = lse - tgt
    pt = jnp.exp(-ce)
    return jnp.mean(alpha * (1.0 - pt) ** gamma * ce)


if __name__ == "__main__":
    key = jax.random.PRNGKey(0)

    # Test 1: f32, gamma == 2 fast path, single block / single chunk.
    k1, k2, key = jax.random.split(key, 3)
    N, C = 16, 32
    logits = jax.random.normal(k1, (N, C), dtype=jnp.float32)
    targets = jax.random.randint(k2, (N,), 0, C, dtype=jnp.int32)
    loss = jax.block_until_ready(focal_loss(logits, targets, alpha=0.25, gamma=2.0))
    ref = _focal_loss_ref(logits, targets, 0.25, 2.0)
    assert jnp.allclose(loss, ref, rtol=1e-4, atol=1e-6), (loss, ref)

    # Test 2: explicit small row_tile (multi-block grid), non-integral gamma.
    k1, k2, key = jax.random.split(key, 3)
    N2, C2 = 40, 32
    logits2 = jax.random.normal(k1, (N2, C2), dtype=jnp.float32)
    targets2 = jax.random.randint(k2, (N2,), 0, C2, dtype=jnp.int32)
    loss2 = jax.block_until_ready(
        focal_loss(logits2, targets2, alpha=0.5, gamma=1.5, row_tile=8))
    ref2 = _focal_loss_ref(logits2, targets2, 0.5, 1.5)
    assert jnp.allclose(loss2, ref2, rtol=1e-4, atol=1e-6), (loss2, ref2)

    # Test 3: bf16 logits (halves HBM traffic); math still f32 in-kernel.
    logits3 = logits.astype(jnp.bfloat16)
    loss3 = jax.block_until_ready(focal_loss(logits3, targets, alpha=0.25, gamma=2.0))
    ref3 = _focal_loss_ref(logits3, targets, 0.25, 2.0)
    assert jnp.allclose(loss3, ref3, rtol=1e-4, atol=1e-6), (loss3, ref3)

    # Test 4: ragged N, unrolled multi-chunk path + gated tail mask.
    k1, k2, key = jax.random.split(key, 3)
    N4, C4 = 600, 16
    logits4 = jax.random.normal(k1, (N4, C4), dtype=jnp.float32)
    targets4 = jax.random.randint(k2, (N4,), 0, C4, dtype=jnp.int32)
    loss4 = jax.block_until_ready(focal_loss(logits4, targets4, alpha=0.25, gamma=2.0))
    ref4 = _focal_loss_ref(logits4, targets4, 0.25, 2.0)
    assert jnp.allclose(loss4, ref4, rtol=1e-4, atol=1e-6), (loss4, ref4)

    # Test 5: ragged N, fori_loop multi-chunk path (>8 chunks in one block).
    k1, k2, key = jax.random.split(key, 3)
    N5, C5 = 2500, 8
    logits5 = jax.random.normal(k1, (N5, C5), dtype=jnp.float32)
    targets5 = jax.random.randint(k2, (N5,), 0, C5, dtype=jnp.int32)
    loss5 = jax.block_until_ready(focal_loss(logits5, targets5, alpha=0.25, gamma=2.0))
    ref5 = _focal_loss_ref(logits5, targets5, 0.25, 2.0)
    assert jnp.allclose(loss5, ref5, rtol=1e-4, atol=1e-6), (loss5, ref5)

    print("KERNEL_OK")
</pallas_src>

<mosaic_0001>
module attributes {stable_mosaic.version = 11 : i64} {
  func.func @_focal_loss_kernel(%arg0: i32, %arg1: i32, %arg2: memref<16x32xf32, #tpu.memory_space<vmem>>, %arg3: memref<16x1xi32, #tpu.memory_space<vmem>>, %arg4: memref<8x128xf32, #tpu.memory_space<vmem>>, %arg5: memref<16x1xf32, #tpu.memory_space<vmem>>) attributes {dimension_semantics = [#tpu.dimension_semantics<parallel>, #tpu.dimension_semantics<arbitrary>], iteration_bounds = array<i64: 1, 1>, scalar_prefetch = 0 : i64, scratch_operands = 1 : i64, tpu.core_type = #tpu.core_type<tc>, window_params = [{transform_indices = @transform_0, window_bounds = array<i64: 16, 32>}, {transform_indices = @transform_1, window_bounds = array<i64: 16, 1>}, {transform_indices = @transform_2, window_bounds = array<i64: 8, 128>}]} {
    %c0_i32 = arith.constant 0 : i32
    %0 = arith.cmpi eq, %arg1, %c0_i32 : i32
    %1 = arith.extui %0 : i1 to i32
    %c0_i32_0 = arith.constant 0 : i32
    %2 = arith.cmpi ne, %1, %c0_i32_0 : i32
    scf.if %2 {
      %cst_19 = arith.constant 0.000000e+00 : f32
      %46 = vector.broadcast %cst_19 : f32 to vector<16x1xf32>
      %c0_20 = arith.constant 0 : index
      %c0_21 = arith.constant 0 : index
      %47 = vector.load %arg5[%c0_20, %c0_21] : memref<16x1xf32, #tpu.memory_space<vmem>>, vector<16x1xf32>
      tpu.vector_store %arg5[%c0_20, %c0_21], %46 {strides = array<i32>} : memref<16x1xf32, #tpu.memory_space<vmem>>, vector<16x1xf32>,
    } else {
    }
    %c1_i32 = arith.constant 1 : i32
    %3 = arith.muli %arg0, %c1_i32 : i32
    %4 = arith.addi %3, %arg1 : i32
    %c16_i32 = arith.constant 16 : i32
    %5 = arith.muli %4, %c16_i32 : i32
    %c0 = arith.constant 0 : index
    %c0_1 = arith.constant 0 : index
    %6 = vector.load %arg2[%c0, %c0_1] : memref<16x32xf32, #tpu.memory_space<vmem>>, vector<16x32xf32>
    %c0_2 = arith.constant 0 : index
    %c0_3 = arith.constant 0 : index
    %7 = vector.load %arg3[%c0_2, %c0_3] : memref<16x1xi32, #tpu.memory_space<vmem>>, vector<16x1xi32>
    %cst = arith.constant dense<0xFF800000> : vector<16xf32>
    %8 = vector.multi_reduction <maximumf>, %6, %cst [1] : vector<16x32xf32> to vector<16xf32>
    %9 = vector.shape_cast %8 : vector<16xf32> to vector<16x1xf32>
    %10 = vector.broadcast %9 : vector<16x1xf32> to vector<16x32xf32>
    %11 = arith.subf %6, %10 : vector<16x32xf32>
    %12 = math.exp %11 : vector<16x32xf32>
    %cst_4 = arith.constant dense<0.000000e+00> : vector<16xf32>
    %13 = vector.multi_reduction <add>, %12, %cst_4 [1] : vector<16x32xf32> to vector<16xf32>
    %14 = vector.shape_cast %13 : vector<16xf32> to vector<16x1xf32>
    %15 = tpu.iota {dimensions = array<i32: 1>} : vector<16x32xi32>
    %16 = vector.broadcast %7 : vector<16x1xi32> to vector<16x32xi32>
    %17 = arith.cmpi eq, %15, %16 : vector<16x32xi32>
    %cst_5 = arith.constant 0.000000e+00 : f32
    %18 = vector.broadcast %cst_5 : f32 to vector<16x32xf32>
    %19 = arith.select %17, %6, %18 : vector<16x32xi1>, vector<16x32xf32>
    %cst_6 = arith.constant dense<0.000000e+00> : vector<16xf32>
    %20 = vector.multi_reduction <add>, %19, %cst_6 [1] : vector<16x32xf32> to vector<16xf32>
    %21 = vector.shape_cast %20 : vector<16xf32> to vector<16x1xf32>
    %22 = math.log %14 : vector<16x1xf32>
    %23 = arith.addf %22, %9 : vector<16x1xf32>
    %24 = arith.subf %23, %21 : vector<16x1xf32>
    %cst_7 = arith.constant 0.000000e+00 : f32
    %25 = vector.broadcast %cst_7 : f32 to vector<16x1xf32>
    %26 = arith.subf %25, %24 : vector<16x1xf32>
    %27 = math.exp %26 : vector<16x1xf32>
    %cst_8 = arith.constant 1.000000e+00 : f32
    %28 = vector.broadcast %cst_8 : f32 to vector<16x1xf32>
    %29 = arith.subf %28, %27 : vector<16x1xf32>
    %cst_9 = arith.constant 0.000000e+00 : f32
    %30 = vector.broadcast %cst_9 : f32 to vector<16x1xf32>
    %31 = arith.maximumf %29, %30 : vector<16x1xf32>
    %32 = arith.mulf %31, %31 : vector<16x1xf32>
    %33 = arith.mulf %32, %24 : vector<16x1xf32>
    %c0_i32_10 = arith.constant 0 : i32
    %34 = arith.addi %5, %c0_i32_10 : i32
    %c16_i32_11 = arith.constant 16 : i32
    %35 = arith.addi %34, %c16_i32_11 : i32
    %c16_i32_12 = arith.constant 16 : i32
    %36 = arith.cmpi sle, %35, %c16_i32_12 : i32
    %37 = arith.extui %36 : i1 to i32
    %c0_i32_13 = arith.constant 0 : i32
    %38 = arith.cmpi ne, %37, %c0_i32_13 : i32
    scf.if %38 {
      %c0_19 = arith.constant 0 : index
      %c0_20 = arith.constant 0 : index
      %46 = vector.load %arg5[%c0_19, %c0_20] : memref<16x1xf32, #tpu.memory_space<vmem>>, vector<16x1xf32>
      %47 = arith.addf %46, %33 : vector<16x1xf32>
      %c0_21 = arith.constant 0 : index
      %c0_22 = arith.constant 0 : index
      %48 = vector.load %arg5[%c0_21, %c0_22] : memref<16x1xf32, #tpu.memory_space<vmem>>, vector<16x1xf32>
      tpu.vector_store %arg5[%c0_21, %c0_22], %47 {strides = array<i32>} : memref<16x1xf32, #tpu.memory_space<vmem>>, vector<16x1xf32>,
    } else {
    }
    %c16_i32_14 = arith.constant 16 : i32
    %39 = arith.addi %34, %c16_i32_14 : i32
    %c16_i32_15 = arith.constant 16 : i32
    %40 = arith.cmpi sgt, %39, %c16_i32_15 : i32
    %41 = arith.extui %40 : i1 to i32
    %c0_i32_16 = arith.constant 0 : i32
    %42 = arith.cmpi ne, %41, %c0_i32_16 : i32
    scf.if %42 {
      %46 = tpu.iota {dimensions = array<i32: 0>} : vector<16x1xi32>
      %47 = vector.broadcast %34 : i32 to vector<16x1xi32>
      %48 = arith.addi %47, %46 : vector<16x1xi32>
      %c0_19 = arith.constant 0 : index
      %c0_20 = arith.constant 0 : index
      %49 = vector.load %arg5[%c0_19, %c0_20] : memref<16x1xf32, #tpu.memory_space<vmem>>, vector<16x1xf32>
      %c16_i32_21 = arith.constant 16 : i32
      %50 = vector.broadcast %c16_i32_21 : i32 to vector<16x1xi32>
      %51 = arith.cmpi slt, %48, %50 : vector<16x1xi32>
      %cst_22 = arith.constant 0.000000e+00 : f32
      %52 = vector.broadcast %cst_22 : f32 to vector<16x1xf32>
      %53 = arith.select %51, %33, %52 : vector<16x1xi1>, vector<16x1xf32>
      %54 = arith.addf %49, %53 : vector<16x1xf32>
      %c0_23 = arith.constant 0 : index
      %c0_24 = arith.constant 0 : index
      %55 = vector.load %arg5[%c0_23, %c0_24] : memref<16x1xf32, #tpu.memory_space<vmem>>, vector<16x1xf32>
      tpu.vector_store %arg5[%c0_23, %c0_24], %54 {strides = array<i32>} : memref<16x1xf32, #tpu.memory_space<vmem>>, vector<16x1xf32>,
    } else {
    }
    %c0_i32_17 = arith.constant 0 : i32
    %43 = arith.cmpi eq, %arg1, %c0_i32_17 : i32
    %44 = arith.extui %43 : i1 to i32
    %c0_i32_18 = arith.constant 0 : i32
    %45 = arith.cmpi ne, %44, %c0_i32_18 : i32
    scf.if %45 {
      %c0_19 = arith.constant 0 : index
      %c0_20 = arith.constant 0 : index
      %46 = vector.load %arg5[%c0_19, %c0_20] : memref<16x1xf32, #tpu.memory_space<vmem>>, vector<16x1xf32>
      %47 = vector.shape_cast %46 : vector<16x1xf32> to vector<1x16x1xf32>
      %cst_21 = arith.constant dense<0.000000e+00> : vector<1xf32>
      %48 = vector.multi_reduction <add>, %47, %cst_21 [1, 2] : vector<1x16x1xf32> to vector<1xf32>
      %49 = vector.shape_cast %48 : vector<1xf32> to vector<1x1x1xf32>
      %50 = vector.extract %49[0, 0, 0] : f32 from vector<1x1x1xf32>
      %51 = vector.broadcast %50 : f32 to vector<8x128xf32>
      %c0_22 = arith.constant 0 : index
      %c0_23 = arith.constant 0 : index
      %52 = vector.load %arg4[%c0_22, %c0_23] : memref<8x128xf32, #tpu.memory_space<vmem>>, vector<8x128xf32>
      tpu.vector_store %arg4[%c0_22, %c0_23], %51 {strides = array<i32>} : memref<8x128xf32, #tpu.memory_space<vmem>>, vector<8x128xf32>,
    } else {
    }
    return
  }
  func.func @transform_0(%arg0: i32, %arg1: i32) -> (i32, i32) {
    %c1_i32 = arith.constant 1 : i32
    %0 = arith.muli %arg0, %c1_i32 : i32
    %1 = arith.addi %0, %arg1 : i32
    %c0_i32 = arith.constant 0 : i32
    %c0_i32_0 = arith.constant 0 : i32
    return %1, %c0_i32 : i32, i32
  }
  func.func @transform_1(%arg0: i32, %arg1: i32) -> (i32, i32) {
    %c1_i32 = arith.constant 1 : i32
    %0 = arith.muli %arg0, %c1_i32 : i32
    %1 = arith.addi %0, %arg1 : i32
    %c0_i32 = arith.constant 0 : i32
    %c0_i32_0 = arith.constant 0 : i32
    return %1, %c0_i32 : i32, i32
  }
  func.func @transform_2(%arg0: i32, %arg1: i32) -> (i32, i32) {
    %c0_i32 = arith.constant 0 : i32
    %c0_i32_0 = arith.constant 0 : i32
    return %arg0, %c0_i32 : i32, i32
  }
}

</mosaic_0001>

<bundles_post_ra>
// kernel: tpu_custom_call.1
= control target key start
LH: loop header
LB: loop body
LE: loop exit
PB: predicated region body
PF: predicated region fallthrough
CT: control target
= control target key end

     0   :  { %vm69_vm0 = vcmask 261120   ;;  %v248_v4 = vmov 0   ;;  %s293_s0 = inlined_call_operand.vmem [shape: f32[16,32], index: 0, kind: input, shape index: {}]   ;;  %s294_s1 = inlined_call_operand.vmem [shape: s32[16,1], index: 1, kind: input, shape index: {}]   ;;  %s295_s2 = inlined_call_operand.hbm [shape: f32[8,128], index: 2, kind: output, shape index: {}]  }
   0x1   :  { %v65_v0 = vld [vmem:[%s293_s0] sm:$0xff]  ;;  %v66_v1 = vld [vmem:[%s293_s0 + $0x8] sm:$0xff]  ;;  %212 = vset.pattern.permute.xlu1 %v248_v4  ;;  %213 = vset.pattern.permute.xlu0 %v248_v4 }
   0x2   :  { %v67_v2 = vld [vmem:[%s294_s1] sm:$0xff]  ;;  %v70_v3 = vsel %vm69_vm0, %v65_v0, -inf }
   0x3   :  { %7 = vsyncpa [#allocation4], 0  ;;  %71 = vmax.xlane.f32.xlu0 %v70_v3  ;;  %91 = vperm.xlu1 %212, %v67_v2   ;;  %v73_v5 = vsel %vm69_vm0, %v66_v1, -inf  ;;  %v68_v6 = vld [vmem:[%s294_s1 + $0x8] sm:$0xff]  ;;  %v88_v13 = vlaneseq  ;;  %vm60_vm3 = vcmask 7168   ;;  %v249_v25 = vmov 0.0  }
   0x4   :  { %61 = vst.msk [vmem:[#allocation2] sm:$0xff] %vm60_vm3, %v249_v25  ;;  %62 = vst.msk [vmem:[#allocation2 + $0x8] sm:$0xff] %vm60_vm3, %v249_v25  ;;  %s250_s0 = smov [#allocation3]  }
   0x5   :  { %v89_v15 = vand.u32 127, %v88_v13  ;;  %s187_s1 = sshll.u32 %s250_s0, 4  ;;  %s188_s1 = int_to_ptr.vmem [resolvable:$true] %s187_s1 }
   0x6   :  { %s226_s18 = scalar_lea.vmem %s188_s1, 128  ;;  %p231_p1 = scmp.lt.s32.totalorder %s188_s1, %s188_s1 }
   0x7   :  { %74 = vmax.xlane.f32.xlu0 %v73_v5  ;;  %94 = vperm.xlu1 %212, %v68_v6   ;;  %p227_p0 = scmp.ne.s32.totalorder %s188_s1, %s226_s18  ;;  %p232_p2 = scmp.lt.s32.totalorder %s226_s18, %s226_s18 }
   0x9   :  { %p233_p3 = por %p232_p2, %p231_p1 }
   0xb   :  { %v133_v48 = vld [vmem:[#allocation2] sm:$0xff]  ;;  %v134_v53 = vld [vmem:[#allocation2 + $0x8] sm:$0xff]  ;;  %p234_p4 = pnand %p233_p3, %p227_p0 }
  0x7e   :  { %v92_v14 = vpop.permute.xlu1 %91 }
  0x7f   :  { %vm96_vm1 = vcmp.eq.s32.totalorder %v89_v15, %v92_v14 }
  0x80   :  { %v98_v18 = vsel %vm96_vm1, %v65_v0, 0.0 }
  0x81   :  { %v100_v20 = vsel %vm69_vm0, %v98_v18, 0.0 }
  0x82   :  { %v95_v16 = vpop.permute.xlu1 %94 }
  0x83   :  { %vm97_vm2 = vcmp.eq.s32.totalorder %v89_v15, %v95_v16 }
  0x84   :  { %v99_v22 = vsel %vm97_vm2, %v66_v1, 0.0 }
  0x85   :  { %v103_v24 = vsel %vm69_vm0, %v99_v22, 0.0 }
  0x8c   :  { %v72_v7 = vpop.xlane.xlu0 %71 }
  0x8d   :  { %v76_v8 = vsub.f32 %v65_v0, %v72_v7 }
  0x8f   :  { %v78_v9 = vmul.f32 1.442695, %v76_v8 }
  0x90   :  { %v75_v10 = vpop.xlane.xlu0 %74 }
  0x91   :  { %214 = vpow2.f32 %v78_v9  ;;  %v77_v11 = vsub.f32 %v66_v1, %v75_v10 }
  0x93   :  { %v80_v12 = vmul.f32 1.442695, %v77_v11 }
  0x95   :  { %216 = vpow2.f32 %v80_v12 }
  0x9e   :  { %v215_v17 = vpop.eup %214 }
  0x9f   :  { %v82_v19 = vsel %vm69_vm0, %v215_v17, 0.0 }
  0xa0   :  { %83 = vadd.xlane.f32.xlu0 %v82_v19 }
  0xa2   :  { %v217_v21 = vpop.eup %216 }
  0xa3   :  { %v85_v23 = vsel %vm69_vm0, %v217_v21, 0.0 }
  0xa4   :  { %86 = vadd.xlane.f32.xlu1 %v85_v23  ;;  %101 = vadd.xlane.f32.xlu0 %v100_v20 }
  0xa8   :  { %104 = vadd.xlane.f32.xlu0 %v103_v24 }
 0x129   :  { %v84_v26 = vpop.xlane.xlu0 %83 }
 0x12a   :  { %218 = vlog2.f32 %v84_v26 }
 0x12d   :  { %v87_v27 = vpop.xlane.xlu1 %86  ;;  %v102_v30 = vpop.xlane.xlu0 %101 }
 0x12e   :  { %220 = vlog2.f32 %v87_v27 }
 0x131   :  { %v105_v37 = vpop.xlane.xlu0 %104 }
 0x137   :  { %v219_v28 = vpop.eup %218 }
 0x138   :  { %v107_v29 = vmul.f32 0.6931472, %v219_v28 }
 0x13a   :  { %v110_v31 = vadd.f32 %v107_v29, %v72_v7 }
 0x13b   :  { %v221_v32 = vpop.eup %220 }
 0x13c   :  { %v109_v33 = vmul.f32 0.6931472, %v221_v32  ;;  %v112_v34 = vsub.f32 %v110_v31, %v102_v30 }
 0x13e   :  { %v114_v35 = vsub.f32 0.0, %v112_v34  ;;  %v111_v36 = vadd.f32 %v109_v33, %v75_v10 }
 0x140   :  { %v116_v38 = vmul.f32 1.442695, %v114_v35  ;;  %v113_v39 = vsub.f32 %v111_v36, %v105_v37 }
 0x142   :  { %222 = vpow2.f32 %v116_v38  ;;  %v115_v40 = vsub.f32 0.0, %v113_v39 }
 0x144   :  { %v118_v41 = vmul.f32 1.442695, %v115_v40 }
 0x146   :  { %224 = vpow2.f32 %v118_v41 }
 0x14f   :  { %v223_v42 = vpop.eup %222 }
 0x150   :  { %v120_v43 = vsub.f32 1.0, %v223_v42 }
 0x152   :  { %v122_v44 = vmax.f32 %v120_v43, 0.0 }
 0x153   :  { %v225_v45 = vpop.eup %224 }
 0x154   :  { %v124_v46 = vmul.f32 %v122_v44, %v122_v44  ;;  %v121_v47 = vsub.f32 1.0, %v225_v45 }
 0x156   :  { %v126_v49 = vmul.f32 %v124_v46, %v112_v34  ;;  %v123_v50 = vmax.f32 %v121_v47, 0.0 }
 0x158   :  { %v135_v51 = vadd.f32 %v133_v48, %v126_v49  ;;  %v125_v52 = vmul.f32 %v123_v50, %v123_v50 }
 0x15a   :  { %138 = vst.msk [vmem:[#allocation2] sm:$0xff] %vm60_vm3, %v135_v51  ;;  %v127_v54 = vmul.f32 %v125_v52, %v113_v39 }
 0x15c   :  { %v136_v55 = vadd.f32 %v134_v53, %v127_v54 }
 0x15e   :  { %139 = vst.msk [vmem:[#allocation2 + $0x8] sm:$0xff] %vm60_vm3, %v136_v55 }
 0x161   :  { %v164_v56 = vld [vmem:[#allocation2] sm:$0xff] }
 0x162   :  { %v167_v58 = vsel %vm60_vm3, %v164_v56, 0.0 }
 0x165   :  { %v165_v57 = vld [vmem:[#allocation2 + $0x8] sm:$0xff] }
 0x166   :  { %v168_v59 = vsel %vm60_vm3, %v165_v57, 0.0 }
 0x167   :  { %v169_v60 = vadd.f32 %v168_v59, %v167_v58 }
 0x169   :  { %170 = vadd.xlane.f32.xlu0 %v169_v60 }
 0x1f2   :  { %v171_v61 = vpop.xlane.xlu0 %170 }
 0x1f3   :  { %v172_v62 = vrot.slane %v171_v61, 4 }
 0x1f5   :  { %v173_v63 = vadd.f32 %v172_v62, %v171_v61 }
 0x1f7   :  { %v174_v0 = vrot.slane %v173_v63, 2 }
 0x1f9   :  { %v175_v1 = vadd.f32 %v174_v0, %v173_v63 }
 0x1fb   :  { %v176_v2 = vrot.slane %v175_v1, 1 }
 0x1fd   :  { %v177_v3 = vadd.f32 %v176_v2, %v175_v1 }
 0x1ff   :  { %207 = vpush %v177_v3 }
 0x230   :  { %s208_s17 = spop %207 }
 0x231   :  { %v179_v4 = vstv %s208_s17 }
 0x232   :  { %180 = vst [vmem:[#allocation3] sm:$0xff] %v179_v4 }
 0x233   :  { %237 = shalt.err (!%p234_p4)
}
 0x234   :  { %190 = dma.vmem_to_hbm [thread:$0]  %s188_s1, 128, %s295_s2, [#allocation4]  }
 0x235   :  { %246 = dma.done.wait [#allocation4], 128  }
 0x236   :  { %247 = vsyncadd [#allocation4], 4294967168 }
 0x237   :  { %194 = vsyncpa [#allocation4], 1 }

</bundles_post_ra>
